<compile_context>
chip_gen: v6e
topology: v6e:2x2x1
jax: 0.10.0
libtpu: 0.0.40
codegen_flags: <defaults>
</compile_context>

<pallas_src>
import functools

import jax
import jax.numpy as jnp
from jax.experimental import pallas as pl
from jax.experimental.pallas import tpu as pltpu


# ---------------------------------------------------------------------------
# Pallas kernel: fused unfold + reduction linear for one band of output rows.
#   x_ref : [tho, s, Wo, s*C]   (band of `tho` output rows; feature = (kw, c))
#   w_ref : [s, s*C, N]         (bf16 weight grouped by kh, rows ordered (kw, c))
#   o_ref : [tho*Wo, N]         (2-D, lane/sublane-dense band of output tokens)
# o = sum_kh  reshape(x[:, kh], [tho*Wo, s*C]) @ w[kh]    (bf16 x bf16 -> f32)
# ---------------------------------------------------------------------------
def _patch_merge_kernel(x_ref, w_ref, o_ref):
    tho, s, Wo, sC = x_ref.shape
    M = tho * Wo
    acc = None
    for kh in range(s):  # s == stride (2): tiny static unroll, one MXU dot each
        xk = x_ref[:, kh, :, :].astype(jnp.bfloat16).reshape(M, sC)
        part = jnp.dot(xk, w_ref[kh, :, :], preferred_element_type=jnp.float32)
        acc = part if acc is None else acc + part   # accumulate-into (MRB on v7x)
    o_ref[...] = acc.astype(o_ref.dtype)


def _pick_band(rows, Wo, target_tokens):
    """Output rows (of the [rows, s, Wo, s*C] view) per grid step.

    rows = B*Ho, so bands may span batch boundaries.  Preferences, in order:
      * (tho*Wo) % 8 == 0 unless there is a single step  (sublane-dense 2-D
        output block; required by the (8,128) BlockSpec rule — always
        satisfiable because the single full band is legal).
      * band tokens <= target_tokens (VMEM-derived budget).
      * >= 4 grid steps and an even step count (v7x megacore balance; a no-op
        on single-TC v5e/v6e).
      * then the largest band (per-step overhead amortized, best DMA size).
    """
    best = None
    for tho in range(1, rows + 1):
        if rows % tho:
            continue
        n = rows // tho
        tokens = tho * Wo
        key = (
            (tokens % 8 == 0) or (n == 1),        # hard layout constraint first
            tokens <= target_tokens,               # fits the VMEM budget
            n >= 4,                                # enough steps to shard/pipeline
            (n % 2 == 0) or (n == 1),              # even split across 2 TCs (v7x)
            tokens if tokens <= target_tokens else -tokens,
        )
        if best is None or key > best[0]:
            best = (key, tho)
    return best[1]


def _vmem_capacity_bytes():
    cap = 128 * 1024 * 1024
    try:
        info_cap = getattr(pltpu.get_tpu_info(), "vmem_capacity_bytes", None)
        if info_cap:
            cap = int(info_cap)
    except Exception:  # interpret mode / non-TPU tracing
        pass
    return cap


# ---------------------------------------------------------------------------
# PatchMerging forward
# ---------------------------------------------------------------------------
def patch_merging_forward(x, hw_shape, weight_t, stride=2):
    """
    x        : [B, H*W, C]   (f32 or bf16; output dtype follows x)
    hw_shape : (H, W)  (static)
    weight_t : [stride**2 * C, out_channels]  (nn.Linear weight, transposed,
               rows ordered (c, kh, kw) exactly like torch's unfold output)
    """
    B, L, C = x.shape
    H, W = hw_shape
    assert L == H * W, "input feature has wrong size"
    s = stride

    # Quirky torch padding: pad by H % stride (not (stride - H%stride) % stride).
    pad_h, pad_w = H % s, W % s
    xh = x.reshape(B, H, W, C)                    # free view, stays NHWC
    if pad_h or pad_w:
        # TODO(synk): fold the pad into the kernel (mask the last row/column)
        # to avoid this extra HBM pass when odd H/W inputs are common.
        xh = jnp.pad(xh, ((0, 0), (0, pad_h), (0, pad_w), (0, 0)))
    Hp, Wp = H + pad_h, W + pad_w
    assert Hp % s == 0 and Wp % s == 0, (
        "PatchMerging's pad-by-(H%stride) quirk only yields stride-divisible "
        "sizes for stride=2")
    Ho, Wo = Hp // s, Wp // s
    rows = B * Ho

    K = s * s * C
    N = weight_t.shape[1]
    assert weight_t.shape[0] == K, "weight_t must be [stride**2*C, out_channels]"

    # Permute weight rows (c, kh, kw) -> (kh, kw, c), group by kh, cast bf16.
    w = weight_t.reshape(C, s, s, N).transpose(1, 2, 0, 3).reshape(s, s * C, N)
    w = w.astype(jnp.bfloat16)

    # FREE row-major view: [B, Hp, Wp, C] -> [B*Ho, s, Wo, s*C].
    # Element (r=b*Ho+ho, kh, wo, kw*C+c)  ==  xh[b, s*ho + kh, s*wo + kw, c].
    xv = xh.reshape(rows, s, Wo, s * C)

    out_dtype = x.dtype            # bf16 in -> bf16 out (halves output HBM bytes)

    # ---- generation-aware band sizing / VMEM limit -------------------------
    vmem_cap = _vmem_capacity_bytes()
    # ~96 MiB scoped limit on 128-MiB parts (v5e/v6e), ~48 MiB on v7x (64 MiB).
    vmem_limit = min(vmem_cap * 3 // 4, 96 * 1024 * 1024)

    x_item = jnp.dtype(x.dtype).itemsize
    o_item = jnp.dtype(out_dtype).itemsize
    w_bufs = 2 * w.size * 2                              # double-buffered bf16 weight
    per_token = 2 * (s * s * C * x_item + N * o_item)    # double-buffered x + out
    budget = max(vmem_limit - w_bufs - 4 * 1024 * 1024, per_token)
    # 1024-token steps already sit at ~86% of the HBM roofline and keep the
    # per-dot M (and its VMEM-resident f32 accumulator) modest even at C>=384.
    target_tokens = int(min(max(budget // per_token, 256), 1024))

    tho = _pick_band(rows, Wo, target_tokens)
    n_bands = rows // tho

    cost = pl.CostEstimate(
        flops=2 * rows * Wo * K * N,
        transcendentals=0,
        bytes_accessed=(xv.size * x_item + w.size * 2 + rows * Wo * N * o_item),
    )

    out2 = pl.pallas_call(
        _patch_merge_kernel,
        out_shape=jax.ShapeDtypeStruct((rows * Wo, N), out_dtype),
        grid=(n_bands,),
        in_specs=[
            pl.BlockSpec((tho, s, Wo, s * C), lambda r: (r, 0, 0, 0)),
            # Grid-constant weight stays resident in VMEM.
            # TODO(synk): a single-buffered weight (pipeline_mode=pl.Buffered(1))
            # would save ~s*s*C*N*2 bytes on v7x once supported end-to-end here.
            pl.BlockSpec((s, s * C, N), lambda r: (0, 0, 0)),
        ],
        # 2-D lane/sublane-dense output slab, exact N (no pad, no post slice).
        out_specs=pl.BlockSpec((tho * Wo, N), lambda r: (r, 0)),
        compiler_params=pltpu.CompilerParams(
            dimension_semantics=("parallel",),
            vmem_limit_bytes=int(vmem_limit),
        ),
        cost_estimate=cost,
    )(xv, w)

    out = out2.reshape(B, Ho * Wo, N)                 # free view

    # TODO(synk): norm_layer defaults to None in the module, so no LayerNorm is
    # applied here (matches the default constructor).
    # Hardcoded //2 (independent of stride) — faithful to the torch code.
    down_hw_shape = ((H + 1) // 2, (W + 1) // 2)
    return out, down_hw_shape


# ---------------------------------------------------------------------------
# Demo / correctness check
# ---------------------------------------------------------------------------
if __name__ == "__main__":
    B, C_in, H, W = 2, 4, 16, 16
    stride = 2
    out_channels = 8
    sample_dim = stride * stride * C_in  # 16

    key = jax.random.PRNGKey(0)
    kx, kw = jax.random.split(key)

    # Input tokens [B, H*W, C]
    x = jax.random.normal(kx, (B, H * W, C_in), dtype=jnp.float32)

    # nn.Linear(sample_dim, out_channels, bias=False): PyTorch layout is
    # [out_channels, sample_dim]; keep the transposed [sample_dim, out] form.
    w_torch_layout = jax.random.normal(
        kw, (out_channels, sample_dim), dtype=jnp.float32
    ) * (1.0 / jnp.sqrt(sample_dim))
    weight_t = w_torch_layout.T

    fwd = jax.jit(
        functools.partial(patch_merging_forward, stride=stride),
        static_argnums=(1,),
    )

    # Torch-faithful reference: NCHW unfold with (c, kh, kw) feature order,
    # inputs quantized to bf16 like the kernel's MXU operands, f32 accumulation.
    xr = x.reshape(B, H, W, C_in).transpose(0, 3, 1, 2)
    xr = xr.reshape(B, C_in, H // stride, stride, W // stride, stride)
    xr = xr.transpose(0, 2, 4, 1, 3, 5).reshape(
        B, (H // stride) * (W // stride), sample_dim
    )
    xr_q = xr.astype(jnp.bfloat16).astype(jnp.float32)
    w_q = weight_t.astype(jnp.bfloat16).astype(jnp.float32)
    ref = jnp.einsum("blk,kn->bln", xr_q, w_q)

    # 1) f32 activations in / f32 out (module default precision).
    out32, down_hw = fwd(x, (H, W), weight_t)
    out32 = jax.block_until_ready(out32)
    assert out32.shape == (B, (H // stride) * (W // stride), out_channels)
    assert down_hw == ((H + 1) // 2, (W + 1) // 2)
    err32 = float(jnp.max(jnp.abs(out32 - ref)))
    assert jnp.allclose(out32, ref, atol=2e-3, rtol=2e-3), err32

    # 2) bf16 activations in / bf16 out (recommended HBM-bound fast path).
    out16, _ = fwd(x.astype(jnp.bfloat16), (H, W), weight_t)
    out16 = jax.block_until_ready(out16)
    assert out16.dtype == jnp.bfloat16
    err16 = float(jnp.max(jnp.abs(out16.astype(jnp.float32) - ref)))
    assert jnp.allclose(out16.astype(jnp.float32), ref, atol=6e-2, rtol=6e-2), err16

    print("KERNEL_OK")
</pallas_src>

<mosaic_0001>
module attributes {stable_mosaic.version = 11 : i64} {
  func.func @_patch_merge_kernel(%arg0: i32, %arg1: memref<4x2x8x8xf32, #tpu.memory_space<vmem>>, %arg2: memref<2x8x8xbf16, #tpu.memory_space<vmem>>, %arg3: memref<32x8xf32, #tpu.memory_space<vmem>>) attributes {dimension_semantics = [#tpu.dimension_semantics<parallel>], iteration_bounds = array<i64: 4>, scalar_prefetch = 0 : i64, scratch_operands = 0 : i64, tpu.core_type = #tpu.core_type<tc>, window_params = [{transform_indices = @transform_0, window_bounds = array<i64: 4, 2, 8, 8>}, {pipeline_mode = #tpu.pipeline_mode<synchronous>, transform_indices = @transform_1, window_bounds = array<i64: 2, 8, 8>}, {transform_indices = @transform_2, window_bounds = array<i64: 32, 8>}]} {
    %c0 = arith.constant 0 : index
    %c0_0 = arith.constant 0 : index
    %c0_1 = arith.constant 0 : index
    %c0_2 = arith.constant 0 : index
    %0 = vector.load %arg1[%c0, %c0_0, %c0_1, %c0_2] : memref<4x2x8x8xf32, #tpu.memory_space<vmem>>, vector<4x1x8x8xf32>
    %1 = vector.shape_cast %0 : vector<4x1x8x8xf32> to vector<4x8x8xf32>
    %2 = arith.truncf %1 : vector<4x8x8xf32> to vector<4x8x8xbf16>
    %3 = vector.shape_cast %2 : vector<4x8x8xbf16> to vector<32x8xbf16>
    %c0_3 = arith.constant 0 : index
    %c0_4 = arith.constant 0 : index
    %c0_5 = arith.constant 0 : index
    %4 = vector.load %arg2[%c0_3, %c0_4, %c0_5] : memref<2x8x8xbf16, #tpu.memory_space<vmem>>, vector<1x8x8xbf16>
    %5 = vector.shape_cast %4 : vector<1x8x8xbf16> to vector<8x8xbf16>
    %cst = arith.constant dense<0.000000e+00> : vector<32x8xf32>
    %6 = tpu.matmul %3, %5, %cst {dimension_numbers = #tpu.dot_dimension_numbers<[1], [0], [0], [1], [0, 0, 1, 1], [], []>} : vector<32x8xbf16>, vector<8x8xbf16>, vector<32x8xf32> -> vector<32x8xf32>
    %c0_6 = arith.constant 0 : index
    %c1 = arith.constant 1 : index
    %c0_7 = arith.constant 0 : index
    %c0_8 = arith.constant 0 : index
    %7 = vector.load %arg1[%c0_6, %c1, %c0_7, %c0_8] : memref<4x2x8x8xf32, #tpu.memory_space<vmem>>, vector<4x1x8x8xf32>
    %8 = vector.shape_cast %7 : vector<4x1x8x8xf32> to vector<4x8x8xf32>
    %9 = arith.truncf %8 : vector<4x8x8xf32> to vector<4x8x8xbf16>
    %10 = vector.shape_cast %9 : vector<4x8x8xbf16> to vector<32x8xbf16>
    %c1_9 = arith.constant 1 : index
    %c0_10 = arith.constant 0 : index
    %c0_11 = arith.constant 0 : index
    %11 = vector.load %arg2[%c1_9, %c0_10, %c0_11] : memref<2x8x8xbf16, #tpu.memory_space<vmem>>, vector<1x8x8xbf16>
    %12 = vector.shape_cast %11 : vector<1x8x8xbf16> to vector<8x8xbf16>
    %cst_12 = arith.constant dense<0.000000e+00> : vector<32x8xf32>
    %13 = tpu.matmul %10, %12, %cst_12 {dimension_numbers = #tpu.dot_dimension_numbers<[1], [0], [0], [1], [0, 0, 1, 1], [], []>} : vector<32x8xbf16>, vector<8x8xbf16>, vector<32x8xf32> -> vector<32x8xf32>
    %14 = arith.addf %6, %13 : vector<32x8xf32>
    %c0_13 = arith.constant 0 : index
    %c0_14 = arith.constant 0 : index
    %15 = vector.load %arg3[%c0_13, %c0_14] : memref<32x8xf32, #tpu.memory_space<vmem>>, vector<32x8xf32>
    tpu.vector_store %arg3[%c0_13, %c0_14], %14 {strides = array<i32>} : memref<32x8xf32, #tpu.memory_space<vmem>>, vector<32x8xf32>,
    return
  }
  func.func @transform_0(%arg0: i32) -> (i32, i32, i32, i32) {
    %c0_i32 = arith.constant 0 : i32
    %c0_i32_0 = arith.constant 0 : i32
    %c0_i32_1 = arith.constant 0 : i32
    %c0_i32_2 = arith.constant 0 : i32
    return %arg0, %c0_i32, %c0_i32_0, %c0_i32_1 : i32, i32, i32, i32
  }
  func.func @transform_1(%arg0: i32) -> (i32, i32, i32) {
    %c0_i32 = arith.constant 0 : i32
    %c0_i32_0 = arith.constant 0 : i32
    %c0_i32_1 = arith.constant 0 : i32
    %c0_i32_2 = arith.constant 0 : i32
    return %c0_i32, %c0_i32_0, %c0_i32_1 : i32, i32, i32
  }
  func.func @transform_2(%arg0: i32) -> (i32, i32) {
    %c0_i32 = arith.constant 0 : i32
    %c0_i32_0 = arith.constant 0 : i32
    return %arg0, %c0_i32 : i32, i32
  }
}

</mosaic_0001>

<bundles_post_ra>
// kernel: patch_merging_forward.1
= control target key start
LH: loop header
LB: loop body
LE: loop exit
PB: predicated region body
PF: predicated region fallthrough
CT: control target
= control target key end

     0   :  { %s450_s9 = smov 0   ;;  %s481_s0 = inlined_call_operand.vmem [shape: f32[16,2,8,8], index: 0, kind: input, shape index: {}]   ;;  %s482_s1 = inlined_call_operand.vmem [shape: bf16[2,8,8], index: 1, kind: input, shape index: {}]   ;;  %s483_s2 = inlined_call_operand.vmem [shape: f32[128,8], index: 2, kind: output, shape index: {}]  }
   0x1 LB: > { %s369_s10 = sadd.s32 4294967295, %s433_s9   ;;  %p373_p0 = scmp.ge.s32.totalorder %s433_s9, 1  ;;  %s433_s9 = sphi %s450_s9, %s12_s9  }
   0x2   : > { %p114_p1 = scmp.lt.s32.totalorder %s433_s9, 5 }
   0x4   : > { %p115_p2 = pnand %p373_p0, %p114_p1 }
   0x5   : > { %s374_s15 = sshll.u32 (!%p115_p2), %s369_s10, 2 }
   0x6   : > { %118 = sbr.rel (%p115_p2) target bundleno = 221 (0xdd), region = 28  ;;  %p138_p3 = scmp.lt.s32.totalorder (!%p115_p2), %s374_s15, 15 }
   0xb   : > { %v383_v0 = vld [vmem:[%s482_s1 + $0x4] sm:$0xf]  ;;  %vm188_vm0 = vcmask 1043456   ;;  %v159_v1 = vld [vmem:[%s482_s1] sm:$0xf]  ;;  %s485_s15 = smov (!%p138_p3, %s374_s15), 15 }
   0xc   : > { %417 = vmatprep.subr.msk.bf16.mxu0 %vm188_vm0, %v383_v0  ;;  %418 = vmatprep.subr.msk.bf16.mxu1 %vm188_vm0, %v159_v1  ;;  %v190_v2 = vsel %vm188_vm0, %v383_v0, 0  ;;  %v258_v3 = vsel %vm188_vm0, %v159_v1, 0  ;;  %s394_s16 = sshll.u32 %s485_s15, 4  ;;  %vm181_vm1 = vcmask 64512   ;;  %s378_s20 = sshll.u32 %s485_s15, 3 }
   0xd   : > { %406 = vmatpush3.bf16.msra.mxu0 %v190_v2  ;;  %412 = vmatpush3.bf16.msra.mxu1 %v258_v3  ;;  %s142_s19 = scalar_lea.vmem %s481_s0, %s394_s16  ;;  %s148_s23 = scalar_lea.vmem %s483_s2, %s378_s20 }
   0xe   : > { %v379_v4 = vld [vmem:[%s142_s19 + $0x8] sm:$0xff]  ;;  %v380_v5 = vld [vmem:[%s142_s19 + $0x18] sm:$0xff]  ;;  %v151_v6 = vld [vmem:[%s142_s19] sm:$0xff] }
   0xf   : > { %v395_v7 = vpack.c.bf16 %v380_v5, %v379_v4  ;;  %v152_v8 = vld [vmem:[%s142_s19 + $0x10] sm:$0xff]  ;;  %v381_v9 = vld [vmem:[%s142_s19 + $0x28] sm:$0xff]  ;;  %v382_v10 = vld [vmem:[%s142_s19 + $0x38] sm:$0xff] }
  0x10   : > { %v397_v11 = vpack.c.bf16 %v152_v8, %v151_v6  ;;  %v396_v12 = vpack.c.bf16 %v382_v10, %v381_v9  ;;  %v153_v13 = vld [vmem:[%s142_s19 + $0x20] sm:$0xff]  ;;  %v154_v14 = vld [vmem:[%s142_s19 + $0x30] sm:$0xff] }
  0x11   : > { %407 = vmatprep.mubr.msk.bf16.mxu0 %vm181_vm1, %v395_v7  ;;  %v398_v15 = vpack.c.bf16 %v154_v14, %v153_v13 }
  0x12   : > { %413 = vmatprep.mubr.msk.bf16.mxu1 %vm181_vm1, %v397_v11  ;;  %408 = vmatmul.mubr.msk.bf16.vlgmr.msra.gmra.mxu0 %vm181_vm1, %v396_v12 }
  0x13   : > { %414 = vmatmul.mubr.msk.bf16.vlgmr.msra.gmra.mxu1 %vm181_vm1, %v398_v15 }
  0xd2   : > { %v409_v16 = vpop.f32.mrf.mxu0 }
  0xd3   : > { %v415_v17 = vpop.f32.mrf.mxu1 }
  0xd4   : > { %v303_v18 = vadd.f32 %v415_v17, %v409_v16  ;;  %v226_v19 = vpop.f32.mrf.mxu0 }
  0xd5   : > { %v294_v20 = vpop.f32.mrf.mxu1 }
  0xd6   : > { %311 = vst.msk [vmem:[%s148_s23 + $0x10] sm:$0xff] %vm181_vm1, %v303_v18  ;;  %v295_v21 = vadd.f32 %v294_v20, %v226_v19  ;;  %v410_v22 = vpop.f32.mrf.mxu0 }
  0xd7   : > { %v416_v23 = vpop.f32.mrf.mxu1 }
  0xd8   : > { %309 = vst.msk [vmem:[%s148_s23] sm:$0xff] %vm181_vm1, %v295_v21  ;;  %v306_v24 = vadd.f32 %v416_v23, %v410_v22  ;;  %v229_v25 = vpop.f32.mrf.mxu0 }
  0xd9   : > { %v297_v26 = vpop.f32.mrf.mxu1 }
  0xda   : > { %312 = vst.msk [vmem:[%s148_s23 + $0x18] sm:$0xff] %vm181_vm1, %v306_v24  ;;  %v298_v27 = vadd.f32 %v297_v26, %v229_v25 }
  0xdc   : > { %310 = vst.msk [vmem:[%s148_s23 + $0x8] sm:$0xff] %vm181_vm1, %v298_v27 }
  0xdd PF: > { %s12_s9 = sadd.s32 1, %s433_s9  }
  0xde   : > { %p9_p4 = scmp.ge.s32.totalorder %s12_s9, 6  }
  0xe0   :  { %11 = sbr.rel (!%p9_p4) target bundleno = 1 (0x1), region = 60 }

</bundles_post_ra>
